<compile_context>
chip_gen: v7x
topology: tpu7x:2x2x1
jax: 0.10.0
libtpu: 0.0.40
codegen_flags: <defaults>
</compile_context>

<pallas_src>
import jax
import jax.numpy as jnp
from jax.experimental import pallas as pl
from jax.experimental.pallas import tpu as pltpu


def _fused_kernel(xT_ref, w_ref, b_ref, out_ref):
    xT = xT_ref[...]                     # (IN, Bt)  f32, batch on lanes
    w = w_ref[...]                       # (OUT, IN) f32 (torch (out,in) layout)
    b = b_ref[...]                       # (OUT, 1)  f32

    n_out, n_in = w.shape

    # Linear on the VPU: v0T[o, :] = b[o] + sum_k w[o, k] * xT[k, :]
    # (OUT,1) x (1,Bt) broadcast-multiply-adds, statically unrolled (IN=5).
    acc = w[:, 0:1] * xT[0:1, :]
    for k in range(1, n_in):
        acc = acc + w[:, k:k + 1] * xT[k:k + 1, :]
    v0T = acc + b                                     # bias broadcast, hoisted

    # Sigmoid via EUP tanh: sigmoid(x) = 0.5*tanh(0.5*x) + 0.5  (no divide,
    # no overflow-dependent exp(-x) path).
    v1T = 0.5 * jnp.tanh(0.5 * v0T) + 0.5

    # v2=0.7*v1; v3=v1+v2; v4=relu(v3); v5=v4+1.5; v6=softmax(v5).
    # 1.7*sigmoid > 0 so relu is a no-op; softmax is shift-invariant so the
    # +1.5 and the max-subtraction are dropped.  exp(1.7*v1) in (1, 5.48].
    e = jnp.exp(1.7 * v1T)
    s = jnp.sum(e, axis=0, keepdims=True)             # sublane reduce (XLU)
    v6T = e * pl.reciprocal(s, approx=False)          # exact reciprocal

    # Single lane-dense (3*OUT, Bt) output slab: [v6 ; v1 ; v0].
    out_ref[0:n_out, :] = v6T
    out_ref[n_out:2 * n_out, :] = v1T
    out_ref[2 * n_out:3 * n_out, :] = v0T


def _round_up(v, m):
    return ((v + m - 1) // m) * m


def _model_forward_impl(x, w, b, *, block_b=32768):
    """x: (B, IN) f32; w: (OUT, IN) f32 (torch Linear layout); b: (OUT,) f32."""
    B, n_in = x.shape
    n_out = w.shape[0]

    # Tile size: multiple of 128 (lane-dense stores), as large as block_b, but
    # small enough that large batches get >= 4 grid steps (>= 2 per TC on a
    # v7x megacore).  Default 32768 keeps the double-buffered working set
    # comfortably under v5e's scoped-VMEM default as well.
    bt_quarter = _round_up(max(1, -(-B // 4)), 128)   # ceil(B/4), lane-aligned
    bt = max(128, (min(block_b, bt_quarter) // 128) * 128)
    bp = _round_up(B, bt)

    # Batch maps to the 128-lane axis: pad the batch and transpose once.
    xT = jnp.pad(x, ((0, bp - B), (0, 0))).T          # (IN, Bp), zero-padded
    b2 = b.reshape(n_out, 1)

    # Explicit scoped-VMEM budget: double-buffered output slab (24, bt) plus
    # the sublane-padded input tile (8, bt), with headroom; capped well under
    # the v7x 64 MiB physical ceiling.
    in_tile_bytes = 8 * bt * 4
    out_tile_bytes = 3 * n_out * bt * 4
    vmem_limit = int(min(max(2 * (in_tile_bytes + out_tile_bytes) + (2 << 20),
                             24 << 20),
                         48 << 20))

    out = pl.pallas_call(
        _fused_kernel,
        out_shape=jax.ShapeDtypeStruct((3 * n_out, bp), jnp.float32),
        grid=(bp // bt,),
        in_specs=[
            pl.BlockSpec((n_in, bt), lambda i: (0, i)),       # xT tile
            pl.BlockSpec((n_out, n_in), lambda i: (0, 0)),    # full weight
            pl.BlockSpec((n_out, 1), lambda i: (0, 0)),       # full bias
        ],
        out_specs=pl.BlockSpec((3 * n_out, bt), lambda i: (0, i)),
        compiler_params=pltpu.CompilerParams(
            dimension_semantics=("parallel",),
            vmem_limit_bytes=vmem_limit),
    )(xT, w, b2)

    # One fused slice + (free) reshape + transpose instead of three separate
    # slice+.T ops; XLA fuses this into a single copy per output.
    stacked = out[:, :B].reshape(3, n_out, B).transpose(0, 2, 1)  # (3, B, OUT)
    v6, v1, v0 = stacked[0], stacked[1], stacked[2]
    return v6, v1, v0


model_forward = jax.jit(_model_forward_impl, static_argnames=("block_b",))


if __name__ == "__main__":
    key = jax.random.PRNGKey(0)
    k_x, k_w, k_b, k_x2 = jax.random.split(key, 4)

    IN, OUT = 5, 8
    bound = 1.0 / (IN ** 0.5)
    # Parameters in torch Linear layout: weight (OUT, IN), bias (OUT,).
    w_torch = jax.random.uniform(k_w, (OUT, IN), minval=-bound, maxval=bound,
                                 dtype=jnp.float32)
    b1 = jax.random.uniform(k_b, (OUT,), minval=-bound, maxval=bound,
                            dtype=jnp.float32)

    def ref_forward(x):
        v0 = x @ w_torch.T + b1
        v1 = jax.nn.sigmoid(v0)
        v3 = v1 + 0.7 * v1
        v4 = jnp.maximum(v3, 0.0)
        v5 = v4 + 1.5
        v6 = jax.nn.softmax(v5, axis=-1)
        return v6, v1, v0

    # Spec-sized input (batch=1, as in the PyTorch module).
    x_small = jax.random.normal(k_x, (1, IN), dtype=jnp.float32)
    # Larger batch exercising padding and a multi-step grid.
    x_big = jax.random.normal(k_x2, (300, IN), dtype=jnp.float32)

    cases = [
        (x_small, {}),
        (x_big, {}),                 # bt=128 via the >=4-steps rule, 3 tiles
        (x_big, {"block_b": 128}),   # explicit small tile, 3-step grid
    ]
    for x, kw in cases:
        v6, v1, v0 = model_forward(x, w_torch, b1, **kw)
        jax.block_until_ready((v6, v1, v0))
        v6_r, v1_r, v0_r = ref_forward(x)
        assert v0.shape == v0_r.shape and v1.shape == v1_r.shape \
            and v6.shape == v6_r.shape, "shape mismatch"
        assert jnp.allclose(v0, v0_r, atol=1e-5), "v0 mismatch"
        assert jnp.allclose(v1, v1_r, atol=2e-5), "v1 mismatch"
        assert jnp.allclose(v6, v6_r, atol=5e-5), "v6 mismatch"

    print("KERNEL_OK")
</pallas_src>

<mosaic_0001>
module attributes {stable_mosaic.version = 11 : i64} {
  func.func @_fused_kernel(%arg0: i32, %arg1: memref<5x128xf32, #tpu.memory_space<vmem>>, %arg2: memref<8x5xf32, #tpu.memory_space<vmem>>, %arg3: memref<8x1xf32, #tpu.memory_space<vmem>>, %arg4: memref<24x128xf32, #tpu.memory_space<vmem>>) attributes {dimension_semantics = [#tpu.dimension_semantics<parallel>], iteration_bounds = array<i64: 1>, scalar_prefetch = 0 : i64, scratch_operands = 0 : i64, tpu.core_type = #tpu.core_type<tc>, window_params = [{transform_indices = @transform_0, window_bounds = array<i64: 5, 128>}, {pipeline_mode = #tpu.pipeline_mode<synchronous>, transform_indices = @transform_1, window_bounds = array<i64: 8, 5>}, {pipeline_mode = #tpu.pipeline_mode<synchronous>, transform_indices = @transform_2, window_bounds = array<i64: 8, 1>}, {transform_indices = @transform_3, window_bounds = array<i64: 24, 128>}]} {
    %c0 = arith.constant 0 : index
    %c0_0 = arith.constant 0 : index
    %0 = vector.load %arg1[%c0, %c0_0] : memref<5x128xf32, #tpu.memory_space<vmem>>, vector<5x128xf32>
    %c0_1 = arith.constant 0 : index
    %c0_2 = arith.constant 0 : index
    %1 = vector.load %arg2[%c0_1, %c0_2] : memref<8x5xf32, #tpu.memory_space<vmem>>, vector<8x5xf32>
    %c0_3 = arith.constant 0 : index
    %c0_4 = arith.constant 0 : index
    %2 = vector.load %arg3[%c0_3, %c0_4] : memref<8x1xf32, #tpu.memory_space<vmem>>, vector<8x1xf32>
    %3 = vector.extract_strided_slice %1 {offsets = [0, 0], sizes = [8, 1], strides = [1, 1]} : vector<8x5xf32> to vector<8x1xf32>
    %4 = vector.extract_strided_slice %0 {offsets = [0, 0], sizes = [1, 128], strides = [1, 1]} : vector<5x128xf32> to vector<1x128xf32>
    %5 = vector.broadcast %3 : vector<8x1xf32> to vector<8x128xf32>
    %6 = vector.broadcast %4 : vector<1x128xf32> to vector<8x128xf32>
    %7 = arith.mulf %5, %6 : vector<8x128xf32>
    %8 = vector.extract_strided_slice %1 {offsets = [0, 1], sizes = [8, 1], strides = [1, 1]} : vector<8x5xf32> to vector<8x1xf32>
    %9 = vector.extract_strided_slice %0 {offsets = [1, 0], sizes = [1, 128], strides = [1, 1]} : vector<5x128xf32> to vector<1x128xf32>
    %10 = vector.broadcast %8 : vector<8x1xf32> to vector<8x128xf32>
    %11 = vector.broadcast %9 : vector<1x128xf32> to vector<8x128xf32>
    %12 = arith.mulf %10, %11 : vector<8x128xf32>
    %13 = arith.addf %7, %12 : vector<8x128xf32>
    %14 = vector.extract_strided_slice %1 {offsets = [0, 2], sizes = [8, 1], strides = [1, 1]} : vector<8x5xf32> to vector<8x1xf32>
    %15 = vector.extract_strided_slice %0 {offsets = [2, 0], sizes = [1, 128], strides = [1, 1]} : vector<5x128xf32> to vector<1x128xf32>
    %16 = vector.broadcast %14 : vector<8x1xf32> to vector<8x128xf32>
    %17 = vector.broadcast %15 : vector<1x128xf32> to vector<8x128xf32>
    %18 = arith.mulf %16, %17 : vector<8x128xf32>
    %19 = arith.addf %13, %18 : vector<8x128xf32>
    %20 = vector.extract_strided_slice %1 {offsets = [0, 3], sizes = [8, 1], strides = [1, 1]} : vector<8x5xf32> to vector<8x1xf32>
    %21 = vector.extract_strided_slice %0 {offsets = [3, 0], sizes = [1, 128], strides = [1, 1]} : vector<5x128xf32> to vector<1x128xf32>
    %22 = vector.broadcast %20 : vector<8x1xf32> to vector<8x128xf32>
    %23 = vector.broadcast %21 : vector<1x128xf32> to vector<8x128xf32>
    %24 = arith.mulf %22, %23 : vector<8x128xf32>
    %25 = arith.addf %19, %24 : vector<8x128xf32>
    %26 = vector.extract_strided_slice %1 {offsets = [0, 4], sizes = [8, 1], strides = [1, 1]} : vector<8x5xf32> to vector<8x1xf32>
    %27 = vector.extract_strided_slice %0 {offsets = [4, 0], sizes = [1, 128], strides = [1, 1]} : vector<5x128xf32> to vector<1x128xf32>
    %28 = vector.broadcast %26 : vector<8x1xf32> to vector<8x128xf32>
    %29 = vector.broadcast %27 : vector<1x128xf32> to vector<8x128xf32>
    %30 = arith.mulf %28, %29 : vector<8x128xf32>
    %31 = arith.addf %25, %30 : vector<8x128xf32>
    %32 = vector.broadcast %2 : vector<8x1xf32> to vector<8x128xf32>
    %33 = arith.addf %31, %32 : vector<8x128xf32>
    %cst = arith.constant 5.000000e-01 : f32
    %34 = vector.broadcast %cst : f32 to vector<8x128xf32>
    %35 = arith.mulf %34, %33 : vector<8x128xf32>
    %36 = math.tanh %35 : vector<8x128xf32>
    %cst_5 = arith.constant 5.000000e-01 : f32
    %37 = vector.broadcast %cst_5 : f32 to vector<8x128xf32>
    %38 = arith.mulf %37, %36 : vector<8x128xf32>
    %cst_6 = arith.constant 5.000000e-01 : f32
    %39 = vector.broadcast %cst_6 : f32 to vector<8x128xf32>
    %40 = arith.addf %38, %39 : vector<8x128xf32>
    %cst_7 = arith.constant 1.700000e+00 : f32
    %41 = vector.broadcast %cst_7 : f32 to vector<8x128xf32>
    %42 = arith.mulf %41, %40 : vector<8x128xf32>
    %43 = math.exp %42 : vector<8x128xf32>
    %cst_8 = arith.constant dense<0.000000e+00> : vector<128xf32>
    %44 = vector.multi_reduction <add>, %43, %cst_8 [0] : vector<8x128xf32> to vector<128xf32>
    %45 = vector.shape_cast %44 : vector<128xf32> to vector<1x128xf32>
    %46 = tpu.reciprocal %45 : vector<1x128xf32> -> vector<1x128xf32>
    %47 = vector.broadcast %46 : vector<1x128xf32> to vector<8x128xf32>
    %48 = arith.mulf %43, %47 : vector<8x128xf32>
    %c0_9 = arith.constant 0 : index
    %c0_10 = arith.constant 0 : index
    %49 = vector.load %arg4[%c0_9, %c0_10] : memref<24x128xf32, #tpu.memory_space<vmem>>, vector<8x128xf32>
    tpu.vector_store %arg4[%c0_9, %c0_10], %48 {strides = array<i32>} : memref<24x128xf32, #tpu.memory_space<vmem>>, vector<8x128xf32>,
    %c8 = arith.constant 8 : index
    %c0_11 = arith.constant 0 : index
    %50 = vector.load %arg4[%c8, %c0_11] : memref<24x128xf32, #tpu.memory_space<vmem>>, vector<8x128xf32>
    tpu.vector_store %arg4[%c8, %c0_11], %40 {strides = array<i32>} : memref<24x128xf32, #tpu.memory_space<vmem>>, vector<8x128xf32>,
    %c16 = arith.constant 16 : index
    %c0_12 = arith.constant 0 : index
    %51 = vector.load %arg4[%c16, %c0_12] : memref<24x128xf32, #tpu.memory_space<vmem>>, vector<8x128xf32>
    tpu.vector_store %arg4[%c16, %c0_12], %33 {strides = array<i32>} : memref<24x128xf32, #tpu.memory_space<vmem>>, vector<8x128xf32>,
    return
  }
  func.func @transform_0(%arg0: i32) -> (i32, i32) {
    %c0_i32 = arith.constant 0 : i32
    %c0_i32_0 = arith.constant 0 : i32
    return %c0_i32, %arg0 : i32, i32
  }
  func.func @transform_1(%arg0: i32) -> (i32, i32) {
    %c0_i32 = arith.constant 0 : i32
    %c0_i32_0 = arith.constant 0 : i32
    %c0_i32_1 = arith.constant 0 : i32
    return %c0_i32, %c0_i32_0 : i32, i32
  }
  func.func @transform_2(%arg0: i32) -> (i32, i32) {
    %c0_i32 = arith.constant 0 : i32
    %c0_i32_0 = arith.constant 0 : i32
    %c0_i32_1 = arith.constant 0 : i32
    return %c0_i32, %c0_i32_0 : i32, i32
  }
  func.func @transform_3(%arg0: i32) -> (i32, i32) {
    %c0_i32 = arith.constant 0 : i32
    %c0_i32_0 = arith.constant 0 : i32
    return %c0_i32, %arg0 : i32, i32
  }
}

</mosaic_0001>

<bundles_post_ra>
// kernel: _model_forward_impl.1
= control target key start
LH: loop header
LB: loop body
LE: loop exit
PB: predicated region body
PF: predicated region fallthrough
CT: control target
= control target key end

     0   :  { %v112_v0 = vmov 0   ;;  %v113_v1 = vmov 2   ;;  %v114_v3 = vmov 1   ;;  %v115_v4 = vmov 3   ;;  %s155_s1 = inlined_call_operand.vmem [shape: f32[8,5], index: 1, kind: input, shape index: {}]   ;;  %s156_s2 = inlined_call_operand.vmem [shape: f32[8,1], index: 2, kind: input, shape index: {}]   ;;  %s157_s0 = inlined_call_operand.vmem [shape: f32[5,128], index: 0, kind: input, shape index: {}]   ;;  %s158_s3 = inlined_call_operand.vmem [shape: f32[24,128], index: 3, kind: output, shape index: {}]  }
   0x1   :  { %100 = vset.pattern.permute.xlu0 %v112_v0  ;;  %102 = vset.pattern.permute.xlu1 %v113_v1  ;;  %v15_v2 = vld [vmem:[%s155_s1] sm:$0xff]  ;;  %v116_v6 = vmov 4   ;;  %v22_v7 = vlaneseq }
   0x2   :  { %19 = vperm.xlu0 %100, %v15_v2   ;;  %38 = vperm.xlu1 %102, %v15_v2   ;;  %v16_v5 = vld [vmem:[%s156_s2] sm:$0xff] }
   0x3   :  { %v23_v8 = vshrl.u32 %v22_v7, 7  ;;  %v14_v11 = vld [vmem:[%s157_s0] sm:$0x1f] }
   0x5   :  { %v24_v9 = vsub.s32 0, %v23_v8  ;;  %v33_v10 = vsub.s32 1, %v23_v8  ;;  %v43_v13 = vsub.s32 2, %v23_v8  ;;  %v53_v17 = vsub.s32 3, %v23_v8 }
   0x6   :  { %101 = vset.pattern.permute.xlu0 %v114_v3  ;;  %103 = vset.pattern.permute.xlu1 %v115_v4  ;;  %v63_v18 = vsub.s32 4, %v23_v8 }
   0x7   :  { %28 = vperm.xlu0 %101, %v15_v2   ;;  %48 = vperm.xlu1 %103, %v15_v2   ;;  %v25_v15 = vrot.slane %v14_v11, %v24_v9  ;;  %v34_v16 = vrot.slane %v14_v11, %v33_v10  ;;  %v44_v19 = vrot.slane %v14_v11, %v43_v13 }
   0x8   :  { %v54_v24 = vrot.slane %v14_v11, %v53_v17  ;;  %v64_v25 = vrot.slane %v14_v11, %v63_v18 }
   0xb   :  { %104 = vset.pattern.permute.xlu1 %v116_v6  ;;  %105 = vset.pattern.permute.xlu0 %v112_v0 }
   0xc   :  { %58 = vperm.xlu1 %104, %v15_v2   ;;  %69 = vperm.xlu0 %105, %v16_v5  }
  0x81   :  { %v20_v12 = vpop.permute.xlu0 %19  ;;  %v39_v14 = vpop.permute.xlu1 %38 }
  0x82   :  { %v26_v22 = vmul.f32 %v25_v15, %v20_v12  ;;  %v45_v26 = vmul.f32 %v44_v19, %v39_v14 }
  0x86   :  { %v29_v20 = vpop.permute.xlu0 %28  ;;  %v49_v21 = vpop.permute.xlu1 %48 }
  0x87   :  { %v35_v23 = vmul.f32 %v34_v16, %v29_v20  ;;  %v55_v29 = vmul.f32 %v54_v24, %v49_v21 }
  0x89   :  { %v36_v27 = vadd.f32 %v35_v23, %v26_v22 }
  0x8b   :  { %v46_v28 = vadd.f32 %v45_v26, %v36_v27  ;;  %v59_v30 = vpop.permute.xlu1 %58  ;;  %v70_v33 = vpop.permute.xlu0 %69 }
  0x8c   :  { %v65_v31 = vmul.f32 %v64_v25, %v59_v30 }
  0x8d   :  { %v56_v32 = vadd.f32 %v55_v29, %v46_v28 }
  0x8f   :  { %v66_v34 = vadd.f32 %v65_v31, %v56_v32 }
  0x91   :  { %v72_v35 = vadd.f32 %v70_v33, %v66_v34 }
  0x93   :  { %v73_v36 = vmul.f32 0.5, %v72_v35  ;;  %90 = vst [vmem:[%s158_s3 + $0x10] sm:$0xff] %v72_v35 }
  0x95   :  { %106 = vtanh.f32 %v73_v36 }
  0x9f   :  { %v107_v37 = vpop.eup %106 }
  0xa0   :  { %v75_v38 = vmul.f32 0.5, %v107_v37 }
  0xa2   :  { %v76_v39 = vadd.f32 0.5, %v75_v38 }
  0xa4   :  { %v77_v40 = vmul.f32 1.7, %v76_v39  ;;  %89 = vst [vmem:[%s158_s3 + $0x8] sm:$0xff] %v76_v39 }
  0xa6   :  { %v78_v41 = vmul.f32 1.442695, %v77_v40 }
  0xa8   :  { %108 = vpow2.f32 %v78_v41 }
  0xb2   :  { %v109_v42 = vpop.eup %108 }
  0xb3   :  { %v80_v43 = vrot.slane %v109_v42, 4 }
  0xb5   :  { %v81_v44 = vadd.f32 %v109_v42, %v80_v43 }
  0xb7   :  { %v82_v45 = vrot.slane %v81_v44, 2 }
  0xb9   :  { %v83_v46 = vadd.f32 %v82_v45, %v81_v44 }
  0xbb   :  { %v84_v47 = vrot.slane %v83_v46, 1 }
  0xbd   :  { %v85_v48 = vadd.f32 %v84_v47, %v83_v46 }
  0xbf   :  { %110 = vrcp.f32 %v85_v48 }
  0xc9   :  { %v111_v49 = vpop.eup %110 }
  0xca   :  { %v87_v50 = vmul.f32 %v111_v49, %v109_v42 }
  0xcc   :  { %88 = vst [vmem:[%s158_s3] sm:$0xff] %v87_v50 }

</bundles_post_ra>
